<compile_context>
chip_gen: v7x
topology: tpu7x:2x2x1
jax: 0.10.0
libtpu: 0.0.40
codegen_flags: <defaults>
</compile_context>

<pallas_src>
import functools

import jax
import jax.numpy as jnp
from jax.experimental import pallas as pl
from jax.experimental.pallas import tpu as pltpu


def _patch_embed_kernel(p_ref, w_ref, pos_ref, o_ref):
    # p_ref:   (TILE_M, K)      bf16 patch rows for this M tile
    # w_ref:   (K, E_pad)       bf16 projection weight (grid-invariant)
    # pos_ref: (TILE_M, E_pad)  f32 pos_embed + bias, tiled per image group
    # o_ref:   (TILE_M, E_pad)  output tile (lane-dense)
    acc = jnp.dot(p_ref[...], w_ref[...], preferred_element_type=jnp.float32)
    o_ref[...] = (acc + pos_ref[...]).astype(o_ref.dtype)


def _round_up(v, m):
    return (v + m - 1) // m * m


def _pick_group(B, N, target_rows=1024):
    """Images per M tile: largest g with B % g == 0, g*N a legal sublane
    multiple (or the full M extent), and roughly `target_rows` rows/tile."""
    cap = min(B, max(1, target_rows // max(N, 1)))
    for g in range(cap, 0, -1):
        if B % g == 0 and ((g * N) % 8 == 0 or g == B):
            return g
    return B


@functools.partial(jax.jit, static_argnames=("patch_size",))
def patch_embedding(x, weight, bias, pos_embed, patch_size):
    """x: [B, C, H, W] (NCHW). weight: [E, C, P, P] (Conv2d). bias: [E].
    pos_embed: [1, N, E].  Returns [B, N, E] = proj(x).flatten(2).T(1,2) + pos."""
    B, C, H, W = x.shape
    E = weight.shape[0]
    P = patch_size
    Hp, Wp = H // P, W // P
    N = Hp * Wp
    K = C * P * P

    compute_dtype = jnp.bfloat16  # MXU full-rate; accumulation stays f32

    # Patchify: [B, C, H, W] -> [B*N, K]; pixel order (C, P, P) matches the
    # Conv2d weight flattening.  Co-jitted with the kernel call.
    patches = x.reshape(B, C, Hp, P, Wp, P)
    patches = patches.transpose(0, 2, 4, 1, 3, 5).reshape(B * N, K)
    patches = patches.astype(compute_dtype)

    # Conv weight [E, C, P, P] -> [K, E_pad] (lane-dense last dim).
    E_pad = _round_up(E, 128)
    w_mat = weight.reshape(E, K).T.astype(compute_dtype)
    if E_pad != E:
        w_mat = jnp.pad(w_mat, ((0, 0), (0, E_pad - E)))

    # Fold conv bias into the positional embedding; tile per image group so
    # the kernel's pos block is grid-invariant (DMA'd once, stays in VMEM).
    G = _pick_group(B, N)
    TILE_M = G * N
    M = B * N
    pos_bias = (pos_embed[0] + bias[None, :]).astype(jnp.float32)   # (N, E)
    pos_bias = jnp.tile(pos_bias, (G, 1))                           # (TILE_M, E)
    if E_pad != E:
        pos_bias = jnp.pad(pos_bias, ((0, 0), (0, E_pad - E)))

    grid = (M // TILE_M,)

    out_itemsize = jnp.dtype(x.dtype).itemsize
    cost = pl.CostEstimate(
        flops=2 * M * K * E_pad,
        transcendentals=0,
        bytes_accessed=(patches.size * 2 + w_mat.size * 2
                        + pos_bias.size * 4 + M * E_pad * out_itemsize),
    )

    out = pl.pallas_call(
        _patch_embed_kernel,
        out_shape=jax.ShapeDtypeStruct((M, E_pad), x.dtype),
        grid=grid,
        in_specs=[
            pl.BlockSpec((TILE_M, K), lambda m: (m, 0)),
            pl.BlockSpec((K, E_pad), lambda m: (0, 0)),       # grid-invariant
            pl.BlockSpec((TILE_M, E_pad), lambda m: (0, 0)),  # grid-invariant
        ],
        out_specs=pl.BlockSpec((TILE_M, E_pad), lambda m: (m, 0)),
        compiler_params=pltpu.CompilerParams(
            dimension_semantics=("parallel",),
            vmem_limit_bytes=64 << 20,
        ),
        cost_estimate=cost,
    )(patches, w_mat, pos_bias)

    out = out.reshape(B, N, E_pad)
    if E_pad != E:
        out = out[:, :, :E]
    return out


if __name__ == "__main__":
    # Small shapes consistent with the module: in_channels=4, patch_size=4,
    # emb_dim=32, img_size=16  ->  num_patches = (16//4)**2 = 16.
    B, C, P, E, IMG = 2, 4, 4, 32, 16
    N = (IMG // P) ** 2
    K = C * P * P

    key = jax.random.PRNGKey(0)
    k_x, k_w, k_b, k_pos = jax.random.split(key, 4)

    x = jax.random.normal(k_x, (B, C, IMG, IMG), dtype=jnp.float32)
    weight = jax.random.normal(k_w, (E, C, P, P), dtype=jnp.float32) * 0.02
    bias = jax.random.normal(k_b, (E,), dtype=jnp.float32) * 0.02
    pos_embed = jax.random.normal(k_pos, (1, N, E), dtype=jnp.float32)

    out = patch_embedding(x, weight, bias, pos_embed, patch_size=P)
    out = jax.block_until_ready(out)
    assert out.shape == (B, N, E)

    # Reference 1: same arithmetic as the kernel (bf16 inputs, f32 accum).
    patches_ref = x.reshape(B, C, IMG // P, P, IMG // P, P)
    patches_ref = patches_ref.transpose(0, 2, 4, 1, 3, 5).reshape(B, N, K)
    w_ref = weight.reshape(E, K).T
    acc = jnp.einsum(
        "bnk,ke->bne",
        patches_ref.astype(jnp.bfloat16), w_ref.astype(jnp.bfloat16),
        preferred_element_type=jnp.float32)
    ref_bf16 = acc + bias[None, None, :] + pos_embed
    assert jnp.allclose(out, ref_bf16, atol=1e-3, rtol=1e-3)

    # Reference 2: pure f32 module semantics (looser: bf16 input rounding).
    ref_f32 = patches_ref @ w_ref + bias[None, None, :] + pos_embed
    assert jnp.allclose(out, ref_f32, atol=3e-2, rtol=3e-2)

    print("KERNEL_OK")
</pallas_src>

<mosaic_0001>
module attributes {stable_mosaic.version = 11 : i64} {
  func.func @_patch_embed_kernel(%arg0: i32, %arg1: memref<32x64xbf16, #tpu.memory_space<vmem>>, %arg2: memref<64x128xbf16, #tpu.memory_space<vmem>>, %arg3: memref<32x128xf32, #tpu.memory_space<vmem>>, %arg4: memref<32x128xf32, #tpu.memory_space<vmem>>) attributes {dimension_semantics = [#tpu.dimension_semantics<parallel>], iteration_bounds = array<i64: 1>, scalar_prefetch = 0 : i64, scratch_operands = 0 : i64, tpu.core_type = #tpu.core_type<tc>, window_params = [{transform_indices = @transform_0, window_bounds = array<i64: 32, 64>}, {pipeline_mode = #tpu.pipeline_mode<synchronous>, transform_indices = @transform_1, window_bounds = array<i64: 64, 128>}, {pipeline_mode = #tpu.pipeline_mode<synchronous>, transform_indices = @transform_2, window_bounds = array<i64: 32, 128>}, {transform_indices = @transform_3, window_bounds = array<i64: 32, 128>}]} {
    %c0 = arith.constant 0 : index
    %c0_0 = arith.constant 0 : index
    %0 = vector.load %arg1[%c0, %c0_0] : memref<32x64xbf16, #tpu.memory_space<vmem>>, vector<32x64xbf16>
    %c0_1 = arith.constant 0 : index
    %c0_2 = arith.constant 0 : index
    %1 = vector.load %arg2[%c0_1, %c0_2] : memref<64x128xbf16, #tpu.memory_space<vmem>>, vector<64x128xbf16>
    %cst = arith.constant dense<0.000000e+00> : vector<32x128xf32>
    %2 = tpu.matmul %0, %1, %cst {dimension_numbers = #tpu.dot_dimension_numbers<[1], [0], [0], [1], [0, 0, 1, 1], [], []>} : vector<32x64xbf16>, vector<64x128xbf16>, vector<32x128xf32> -> vector<32x128xf32>
    %c0_3 = arith.constant 0 : index
    %c0_4 = arith.constant 0 : index
    %3 = vector.load %arg3[%c0_3, %c0_4] : memref<32x128xf32, #tpu.memory_space<vmem>>, vector<32x128xf32>
    %4 = arith.addf %2, %3 : vector<32x128xf32>
    %c0_5 = arith.constant 0 : index
    %c0_6 = arith.constant 0 : index
    %5 = vector.load %arg4[%c0_5, %c0_6] : memref<32x128xf32, #tpu.memory_space<vmem>>, vector<32x128xf32>
    tpu.vector_store %arg4[%c0_5, %c0_6], %4 {strides = array<i32>} : memref<32x128xf32, #tpu.memory_space<vmem>>, vector<32x128xf32>,
    return
  }
  func.func @transform_0(%arg0: i32) -> (i32, i32) {
    %c0_i32 = arith.constant 0 : i32
    %c0_i32_0 = arith.constant 0 : i32
    return %arg0, %c0_i32 : i32, i32
  }
  func.func @transform_1(%arg0: i32) -> (i32, i32) {
    %c0_i32 = arith.constant 0 : i32
    %c0_i32_0 = arith.constant 0 : i32
    %c0_i32_1 = arith.constant 0 : i32
    return %c0_i32, %c0_i32_0 : i32, i32
  }
  func.func @transform_2(%arg0: i32) -> (i32, i32) {
    %c0_i32 = arith.constant 0 : i32
    %c0_i32_0 = arith.constant 0 : i32
    %c0_i32_1 = arith.constant 0 : i32
    return %c0_i32, %c0_i32_0 : i32, i32
  }
  func.func @transform_3(%arg0: i32) -> (i32, i32) {
    %c0_i32 = arith.constant 0 : i32
    %c0_i32_0 = arith.constant 0 : i32
    return %arg0, %c0_i32 : i32, i32
  }
}

</mosaic_0001>

<bundles_post_ra>
// kernel: patch_embedding.1
= control target key start
LH: loop header
LB: loop body
LE: loop exit
PB: predicated region body
PF: predicated region fallthrough
CT: control target
= control target key end

     0   :  { %8 = vsyncpa [#allocation3], 0  ;;  %s408_s0 = inlined_call_operand.hbm [shape: bf16[32,64], index: 0, kind: input, shape index: {}]   ;;  %s409_s1 = inlined_call_operand.hbm [shape: bf16[64,128], index: 1, kind: input, shape index: {}]   ;;  %s410_s2 = inlined_call_operand.hbm [shape: f32[32,128], index: 2, kind: input, shape index: {}]   ;;  %s411_s3 = inlined_call_operand.hbm [shape: f32[32,128], index: 3, kind: output, shape index: {}]  }
   0x1   :  { %9 = vsyncpa [#allocation6], 0 }
   0x2   :  { %10 = vsyncpa [#allocation4], 0  ;;  %s319_s12 = smov [#allocation5]   ;;  %s320_s14 = smov [#allocation2]  }
   0x3   :  { %s28_s13 = sshll.u32 %s319_s12, 4  ;;  %s16_s15 = sshll.u32 %s320_s14, 4  ;;  %s29_s13 = int_to_ptr.vmem [resolvable:$true] %s28_s13  ;;  %s347_s15 = int_to_ptr.vmem [resolvable:$true] %s16_s15 }
   0x4   :  { %s225_s18 = scalar_lea.hbm %s409_s1, 512 }
   0x5   :  { %p226_p0 = scmp.ne.s32.totalorder %s409_s1, %s225_s18  ;;  %p229_p1 = scmp.lt.u32.totalorder %s225_s18, %s409_s1 }
   0x7   :  { %p231_p2 = pnand %p229_p1, %p226_p0 }
   0x9   :  { %234 = shalt.err (!%p231_p2)
}
   0xa   :  { %s235_s23 = scalar_lea.vmem %s29_s13, 512  ;;  %p240_p4 = scmp.lt.s32.totalorder %s29_s13, %s29_s13 }
   0xb   :  { %p236_p3 = scmp.ne.s32.totalorder %s29_s13, %s235_s23  ;;  %p241_p5 = scmp.lt.s32.totalorder %s235_s23, %s235_s23 }
   0xd   :  { %p242_p6 = por %p241_p5, %p240_p4 }
   0xf   :  { %p243_p7 = pnand %p242_p6, %p236_p3 }
  0x11   :  { %246 = shalt.err (!%p243_p7)
}
  0x12   :  { %s321_s24 = smov 64   ;;  %s322_s25 = smov 4  }
  0x13   :  { %34 = dma.hbm_to_vmem [thread:$0]  %s409_s1, 512, %s29_s13, [#allocation6], %s321_s24, %s321_s24, %s322_s25  }
  0x14   :  { %s247_s30 = scalar_lea.hbm %s408_s0, 256 }
  0x15   :  { %p248_p8 = scmp.ne.s32.totalorder %s408_s0, %s247_s30  ;;  %p251_p9 = scmp.lt.u32.totalorder %s247_s30, %s408_s0 }
  0x17   :  { %p253_p10 = pnand %p251_p9, %p248_p8 }
  0x19   :  { %256 = shalt.err (!%p253_p10)
}
  0x1a   :  { %s257_s8 = scalar_lea.vmem %s347_s15, 256  ;;  %p262_p12 = scmp.lt.s32.totalorder %s347_s15, %s347_s15 }
  0x1b   :  { %p258_p11 = scmp.ne.s32.totalorder %s347_s15, %s257_s8  ;;  %p263_p13 = scmp.lt.s32.totalorder %s257_s8, %s257_s8 }
  0x1d   :  { %p264_p0 = por %p263_p13, %p262_p12 }
  0x1f   :  { %p265_p1 = pnand %p264_p0, %p258_p11 }
  0x21   :  { %268 = shalt.err (!%p265_p1)
}
  0x22   :  { %22 = dma.hbm_to_vmem [thread:$0]  %s408_s0, 256, %s347_s15, [#allocation3], %s321_s24, %s321_s24, %s322_s25  }
  0x23   :  { %s323_s10 = smov [#allocation7]   ;;  %s269_s14 = scalar_lea.hbm %s410_s2, 512 }
  0x24   :  { %s40_s11 = sshll.u32 %s323_s10, 4  ;;  %p270_p2 = scmp.ne.s32.totalorder %s410_s2, %s269_s14  ;;  %s41_s11 = int_to_ptr.vmem [resolvable:$true] %s40_s11 }
  0x25   :  { %p273_p3 = scmp.lt.u32.totalorder %s269_s14, %s410_s2 }
  0x27   :  { %p275_p4 = pnand %p273_p3, %p270_p2 }
  0x29   :  { %278 = shalt.err (!%p275_p4)
}
  0x2a   :  { %s279_s20 = scalar_lea.vmem %s41_s11, 512  ;;  %p284_p6 = scmp.lt.s32.totalorder %s41_s11, %s41_s11 }
  0x2b   :  { %p280_p5 = scmp.ne.s32.totalorder %s41_s11, %s279_s20  ;;  %p285_p7 = scmp.lt.s32.totalorder %s279_s20, %s279_s20 }
  0x2d   :  { %p286_p8 = por %p285_p7, %p284_p6 }
  0x2f   :  { %p287_p9 = pnand %p286_p8, %p280_p5 }
  0x31   :  { %290 = shalt.err (!%p287_p9)
}
  0x32   :  { %s324_s0 = smov 128   ;;  %s325_s15 = smov 8  }
  0x33   :  { %46 = dma.hbm_to_vmem [thread:$0]  %s410_s2, 512, %s41_s11, [#allocation6], %s324_s0, %s324_s0, %s325_s15  }
  0x34   :  { %313 = dma.done.wait [#allocation3], 256  }
  0x35   :  { %314 = vsyncadd [#allocation3], 4294967040 }
  0x36   :  { %315 = dma.done.wait [#allocation6], 1024  }
  0x37   :  { %316 = vsyncadd [#allocation6], 4294966272  ;;  %v219_v0 = vld [vmem:[#allocation5] sm:$0xff]   ;;  %v220_v1 = vld [vmem:[#allocation5 + $0x8] sm:$0xff]   ;;  %vm107_vm0 = vcmask 523264   ;;  %s326_s2 = smov [#allocation8]  }
  0x38   :  { %199 = vmatprep.subr.bf16.mxu0 %v219_v0  ;;  %v221_v2 = vld [vmem:[#allocation5 + $0x10] sm:$0xff]   ;;  %v222_v4 = vld [vmem:[#allocation5 + $0x18] sm:$0xff]   ;;  %v69_v7 = vld [vmem:[#allocation7] sm:$0xff]  ;;  %s172_s23 = sshll.u32 %s326_s2, 4  ;;  %s173_s23 = int_to_ptr.vmem [resolvable:$true] %s172_s23 }
  0x39   :  { %200 = vmatpush3.bf16.msra.mxu0 %v219_v0  ;;  %v223_v3 = vld [vmem:[#allocation2] sm:$0xff]   ;;  %v224_v5 = vld [vmem:[#allocation2 + $0x8] sm:$0xff]   ;;  %v70_v12 = vld [vmem:[#allocation7 + $0x8] sm:$0xff]  ;;  %s291_s24 = scalar_lea.vmem %s173_s23, 512  ;;  %p296_p11 = scmp.lt.s32.totalorder %s173_s23, %s173_s23 }
  0x3a   :  { %201 = vmatprep.subr.bf16.mxu0 %v220_v1  ;;  %207 = vmatprep.mubr.msk.bf16.mxu0 %vm107_vm0, %v223_v3  ;;  %v71_v6 = vld [vmem:[#allocation7 + $0x10] sm:$0xff]  ;;  %v72_v9 = vld [vmem:[#allocation7 + $0x18] sm:$0xff]  ;;  %p292_p10 = scmp.ne.s32.totalorder %s173_s23, %s291_s24  ;;  %p297_p12 = scmp.lt.s32.totalorder %s291_s24, %s291_s24 }
  0x3c   :  { %p298_p13 = por %p297_p12, %p296_p11 }
  0x3d   :  { %202 = vmatpush3.bf16.msra.mxu0 %v220_v1 }
  0x3e   :  { %203 = vmatprep.subr.bf16.mxu0 %v221_v2  ;;  %p299_p0 = pnand %p298_p13, %p292_p10 }
  0x41   :  { %204 = vmatpush3.bf16.msra.mxu0 %v221_v2 }
  0x42   :  { %205 = vmatprep.subr.bf16.mxu0 %v222_v4 }
  0x45   :  { %206 = vmatpush3.bf16.msra.mxu0 %v222_v4 }
  0x48   :  { %208 = vmatmul.mubr.msk.bf16.vlgmr.msra.gmra.mrb[0].mxu0 %vm107_vm0, %v224_v5 }
 0x11b   :  { %v209_v8 = vpop.f32.mrb[0].mxu0 }
 0x11c   :  { %v157_v10 = vadd.f32 %v209_v8, %v71_v6  ;;  %v148_v11 = vpop.f32.mrb[1].mxu0 }
 0x11d   :  { %v149_v13 = vadd.f32 %v148_v11, %v69_v7  ;;  %v210_v14 = vpop.f32.mrb[2].mxu0 }
 0x11e   :  { %165 = vst [vmem:[#allocation8 + $0x10] sm:$0xff] %v157_v10  ;;  %v160_v15 = vadd.f32 %v210_v14, %v72_v9  ;;  %v151_v16 = vpop.f32.mrb[3].mxu0 }
 0x11f   :  { %163 = vst [vmem:[#allocation8] sm:$0xff] %v149_v13  ;;  %v152_v17 = vadd.f32 %v151_v16, %v70_v12 }
 0x120   :  { %166 = vst [vmem:[#allocation8 + $0x18] sm:$0xff] %v160_v15 }
 0x121   :  { %164 = vst [vmem:[#allocation8 + $0x8] sm:$0xff] %v152_v17 }
 0x122   :  { %302 = shalt.err (!%p299_p0)
}
 0x123   :  { %s303_s27 = scalar_lea.hbm %s411_s3, 512 }
 0x124   :  { %p304_p1 = scmp.ne.s32.totalorder %s411_s3, %s303_s27  ;;  %p307_p2 = scmp.lt.u32.totalorder %s303_s27, %s411_s3 }
 0x126   :  { %p309_p3 = pnand %p307_p2, %p304_p1 }
 0x128   :  { %312 = shalt.err (!%p309_p3)
}
 0x129   :  { %178 = dma.vmem_to_hbm [thread:$0]  %s173_s23, 512, %s411_s3, [#allocation4], %s324_s0, %s324_s0, %s325_s15  }
 0x12a   :  { %317 = dma.done.wait [#allocation4], 512  }
 0x12b   :  { %318 = vsyncadd [#allocation4], 4294966784 }
 0x12c   :  { %182 = vsyncpa [#allocation3], 1 }
 0x12d   :  { %183 = vsyncpa [#allocation6], 1 }
 0x12e   :  { %184 = vsyncpa [#allocation4], 1 }

</bundles_post_ra>
